<compile_context>
chip_gen: v7x
topology: tpu7x:2x2x1
jax: 0.10.0
libtpu: 0.0.40
codegen_flags: <defaults>
</compile_context>

<pallas_src>
import functools

import jax
import jax.numpy as jnp
from jax.experimental import pallas as pl
from jax.experimental.pallas import tpu as pltpu

EPS = 1e-5
LANE = 128
SUBLANE = 8


def _round_up(x, m):
    return (x + m - 1) // m * m


def _vmem_budget_bytes():
    """Generation-aware VMEM ceiling (~3/4 of physical: 48 MiB v7x, 96 MiB v5e/v6e)."""
    cap = None
    try:
        cap = getattr(pltpu.get_tpu_info(), "vmem_capacity_bytes", None)
    except Exception:
        cap = None
    if not cap:
        cap = 64 * 1024 * 1024  # conservative fallback (v7x floor)
    return int(cap) * 3 // 4


# ---------------------------------------------------------------------------
# Kernel A: conv matmul per M-tile (bf16 y out) + streaming BatchNorm stats,
#           emitting fused (scale, shift) on the last tile.
# ---------------------------------------------------------------------------
def conv_stats_kernel(xg_ref, w_ref, gamma_ref, beta_ref,     # inputs
                      y_ref, scale_ref, shift_ref,            # outputs
                      mean_run, m2_run,                       # VMEM scratch
                      *, m_real, tm):
    i = pl.program_id(0)
    n_tiles = pl.num_programs(0)

    # Octree conv on gathered children: bf16 operands, f32 accumulation on MXU.
    # (Conv bias intentionally omitted: it is cancelled exactly by the BN mean.)
    y = jnp.dot(xg_ref[...], w_ref[...], preferred_element_type=jnp.float32)
    y_ref[...] = y.astype(y_ref.dtype)                         # bf16 store

    # Mask rows that only exist because M was padded to a multiple of tm.
    row_id = i * tm + jax.lax.broadcasted_iota(jnp.int32, (tm, 1), 0)
    valid = row_id < m_real                                        # [tm, 1]
    n_tile = jnp.minimum(tm, m_real - i * tm).astype(jnp.float32)  # >= 1

    # Tile statistics from the f32 accumulator (exact, independent of bf16 store).
    ym = jnp.where(valid, y, 0.0)
    tile_mean = jnp.sum(ym, axis=0, keepdims=True) / n_tile        # [1, C]
    centered = jnp.where(valid, y - tile_mean, 0.0)
    tile_m2 = jnp.sum(centered * centered, axis=0, keepdims=True)  # [1, C]

    @pl.when(i == 0)
    def _init():
        mean_run[...] = tile_mean
        m2_run[...] = tile_m2

    @pl.when(i > 0)
    def _merge():
        # Chan / parallel-Welford merge (numerically safe).  n_run = i*tm is
        # valid because only the LAST tile can be partial.
        n_run = (i * tm).astype(jnp.float32)
        n_new = n_run + n_tile
        delta = tile_mean - mean_run[...]
        mean_run[...] = mean_run[...] + delta * (n_tile / n_new)
        m2_run[...] = m2_run[...] + tile_m2 + delta * delta * (n_run * n_tile / n_new)

    @pl.when(i == n_tiles - 1)
    def _finalize():
        var = m2_run[...] / float(m_real)                       # biased (BN fwd)
        scale = gamma_ref[...] * jax.lax.rsqrt(var + EPS)
        scale_ref[...] = scale
        shift_ref[...] = beta_ref[...] - mean_run[...] * scale


# ---------------------------------------------------------------------------
# Kernel B: apply BatchNorm as a single FMA with precomputed scale / shift.
# ---------------------------------------------------------------------------
def bn_apply_kernel(y_ref, scale_ref, shift_ref, out_ref):
    y = y_ref[...].astype(jnp.float32)
    out_ref[...] = (y * scale_ref[...] + shift_ref[...]).astype(out_ref.dtype)


# ---------------------------------------------------------------------------
# Wrapper
# ---------------------------------------------------------------------------
def downsample_forward(x, child_idx, child_mask, w, b, gamma, beta,
                       *, tm=1024, out_dtype=jnp.bfloat16):
    """OctreeConv(kernel=2, stride=2, nempty=True) + BatchNorm1d (training) forward.

    x:          [N, Cin]      features of non-empty octants at `depth`
    child_idx:  [M, 8] int32  row of x for each parent's child slot (any value where mask False)
    child_mask: [M, 8] bool   True where the child octant is non-empty
    w:          [8*Cin, Cout] conv weight;   b: [1, Cout] conv bias (cancelled by BN -> unused)
    gamma/beta: [1, Cout]     BatchNorm affine parameters
    returns:    [M, Cout] in out_dtype
    """
    del b  # mathematically a no-op before BatchNorm; not plumbed through the kernel
    N, Cin = x.shape
    M = child_idx.shape[0]
    K8, Cout = w.shape
    assert K8 == 8 * Cin

    Cin_p = _round_up(Cin, LANE // 8)      # per-child channel pad so Kp % 128 == 0
    Kp = 8 * Cin_p
    Cp = _round_up(Cout, LANE)

    # Row tile: big by default (amortize per-step overhead), clamped to M and to
    # the VMEM budget; always a sublane multiple, only the last tile is partial.
    tm = _round_up(max(SUBLANE, min(tm, _round_up(M, SUBLANE))), SUBLANE)
    budget = _vmem_budget_bytes()

    def _need_a(t):
        return (2 * t * Kp * 2           # xg tiles  (bf16, double-buffered)
                + Kp * Cp * 2            # resident weights (bf16)
                + 2 * t * Cp * 2         # y tiles   (bf16, double-buffered)
                + 16 * SUBLANE * Cp * 4)  # gamma/beta/scale/shift/scratch rows

    while tm > 64 and _need_a(tm) > budget:
        tm = _round_up(max(tm // 2, 64), SUBLANE)

    Mp = _round_up(M, tm)
    n_tiles = Mp // tm

    # --- gather children directly into the padded [Mp, Kp] bf16 layout (one pass,
    #     no second re-pad copy of the 8x-amplified intermediate). -----------------
    # TODO(synk): fuse this gather into Kernel A (child_idx/child_mask scalar-prefetched
    # into SMEM, x kept at memory_space=pl.ANY with per-tile DMA) to remove the HBM
    # round trip of xg entirely.
    xb = x.astype(jnp.bfloat16)
    if Cin_p != Cin:
        xb = jnp.pad(xb, ((0, 0), (0, Cin_p - Cin)))
    idx, msk = child_idx, child_mask
    if Mp != M:
        idx = jnp.pad(idx, ((0, Mp - M), (0, 0)))
        msk = jnp.pad(msk, ((0, Mp - M), (0, 0)))       # padded rows -> all empty
    xg = jnp.where(msk[..., None], xb[idx], jnp.zeros((), jnp.bfloat16))
    xg = xg.reshape(Mp, Kp)

    w_p = (jnp.zeros((8, Cin_p, Cp), jnp.bfloat16)
           .at[:, :Cin, :Cout].set(w.reshape(8, Cin, Cout).astype(jnp.bfloat16))
           .reshape(Kp, Cp))
    g_p = jnp.zeros((1, Cp), jnp.float32).at[:, :Cout].set(
        gamma.reshape(1, Cout).astype(jnp.float32))
    be_p = jnp.zeros((1, Cp), jnp.float32).at[:, :Cout].set(
        beta.reshape(1, Cout).astype(jnp.float32))

    # ---- Kernel A: conv + batch statistics -> (y_bf16, scale, shift) -------------
    vmem_a = int(min(budget, max(32 * 1024 * 1024, 2 * _need_a(tm))))
    cost_a = pl.CostEstimate(
        flops=2 * Mp * Kp * Cp, transcendentals=0,
        bytes_accessed=Mp * Kp * 2 + Kp * Cp * 2 + Mp * Cp * 2)
    kernel_a = functools.partial(conv_stats_kernel, m_real=M, tm=tm)
    y, scale, shift = pl.pallas_call(
        kernel_a,
        out_shape=(
            jax.ShapeDtypeStruct((Mp, Cp), jnp.bfloat16),
            jax.ShapeDtypeStruct((1, Cp), jnp.float32),
            jax.ShapeDtypeStruct((1, Cp), jnp.float32),
        ),
        grid_spec=pltpu.PrefetchScalarGridSpec(
            num_scalar_prefetch=0,
            grid=(n_tiles,),
            in_specs=[
                pl.BlockSpec((tm, Kp), lambda i: (i, 0)),
                pl.BlockSpec((Kp, Cp), lambda i: (0, 0)),   # weights resident
                pl.BlockSpec((1, Cp), lambda i: (0, 0)),    # gamma resident
                pl.BlockSpec((1, Cp), lambda i: (0, 0)),    # beta resident
            ],
            out_specs=(
                pl.BlockSpec((tm, Cp), lambda i: (i, 0)),
                pl.BlockSpec((1, Cp), lambda i: (0, 0)),
                pl.BlockSpec((1, Cp), lambda i: (0, 0)),
            ),
            scratch_shapes=[
                pltpu.VMEM((1, Cp), jnp.float32),   # running mean
                pltpu.VMEM((1, Cp), jnp.float32),   # running M2
            ],
        ),
        compiler_params=pltpu.CompilerParams(
            dimension_semantics=("arbitrary",),     # cross-tile stats accumulator
            vmem_limit_bytes=vmem_a,
        ),
        cost_estimate=cost_a,
    )(xg, w_p, g_p, be_p)

    # ---- Kernel B: y*scale + shift (output aliases the y buffer when dtypes match)
    need_b = 4 * tm * Cp * 2 + 4 * SUBLANE * Cp * 4
    vmem_b = int(min(budget, max(32 * 1024 * 1024, 2 * need_b)))
    cost_b = pl.CostEstimate(flops=2 * Mp * Cp, transcendentals=0,
                             bytes_accessed=2 * Mp * Cp * 2)
    alias = {0: 0} if jnp.dtype(out_dtype) == jnp.dtype(jnp.bfloat16) else {}
    out = pl.pallas_call(
        bn_apply_kernel,
        out_shape=jax.ShapeDtypeStruct((Mp, Cp), out_dtype),
        grid_spec=pltpu.PrefetchScalarGridSpec(
            num_scalar_prefetch=0,
            grid=(n_tiles,),
            in_specs=[
                pl.BlockSpec((tm, Cp), lambda i: (i, 0)),
                pl.BlockSpec((1, Cp), lambda i: (0, 0)),
                pl.BlockSpec((1, Cp), lambda i: (0, 0)),
            ],
            out_specs=pl.BlockSpec((tm, Cp), lambda i: (i, 0)),
        ),
        compiler_params=pltpu.CompilerParams(
            # TODO(synk): on v7x use pltpu.CORE_PARALLEL (2-D grid + per-core partial
            # statistics in Kernel A) so both TensorCores are engaged.
            dimension_semantics=("parallel",),
            vmem_limit_bytes=vmem_b,
        ),
        cost_estimate=cost_b,
        input_output_aliases=alias,
    )(y, scale, shift)

    return out[:M, :Cout]


if __name__ == "__main__":
    key = jax.random.PRNGKey(0)
    k_mask, k_x, k_w, k_b, k_g, k_be = jax.random.split(key, 6)

    in_channels = 16
    out_channels = 32
    M = 100      # parent octants at depth-1 (conv outputs)
    TM = 32      # small tile so the test exercises multi-tile stats merging

    # Synthetic octree child structure: which of the 8 child slots are non-empty.
    child_mask = jax.random.bernoulli(k_mask, 0.6, (M, 8))
    child_mask = child_mask.at[:, 0].set(True)        # >=1 child per parent
    flat_mask = child_mask.reshape(-1)
    N = int(flat_mask.sum())                          # non-empty children at `depth`
    child_idx = (jnp.cumsum(flat_mask.astype(jnp.int32)) - 1).reshape(M, 8)
    child_idx = jnp.where(child_mask, child_idx, 0)

    x = jax.random.normal(k_x, (N, in_channels), dtype=jnp.float32)
    w = 0.1 * jax.random.normal(k_w, (8 * in_channels, out_channels), dtype=jnp.float32)
    b = 0.1 * jax.random.normal(k_b, (1, out_channels), dtype=jnp.float32)
    gamma = 1.0 + 0.1 * jax.random.normal(k_g, (1, out_channels), dtype=jnp.float32)
    beta = 0.1 * jax.random.normal(k_be, (1, out_channels), dtype=jnp.float32)

    fwd = jax.jit(functools.partial(downsample_forward, tm=TM, out_dtype=jnp.bfloat16))
    out = jax.block_until_ready(fwd(x, child_idx, child_mask, w, b, gamma, beta))
    assert out.shape == (M, out_channels) and out.dtype == jnp.bfloat16

    # Pure-JAX reference (bf16-operand / f32-accumulate matmul, f32 math after).
    # The kernel stores y and the output in bf16, so allow ~one bf16 ulp of the
    # pre-normalized activations (|y| up to ~3 sigma) of absolute error.
    xg_ref = jnp.where(child_mask[..., None], x[child_idx], 0.0).reshape(M, -1)
    y_ref = jnp.dot(xg_ref.astype(jnp.bfloat16), w.astype(jnp.bfloat16),
                    preferred_element_type=jnp.float32) + b
    mu = y_ref.mean(axis=0, keepdims=True)
    var = ((y_ref - mu) ** 2).mean(axis=0, keepdims=True)     # biased (BN forward)
    ref = (y_ref - mu) * jax.lax.rsqrt(var + EPS) * gamma + beta

    err = jnp.abs(out.astype(jnp.float32) - ref)
    max_err, mean_err = float(err.max()), float(err.mean())
    assert max_err < 3e-2 and mean_err < 5e-3, f"max {max_err} mean {mean_err}"

    # Also exercise the single-tile path (default tm clamps to M).
    out2 = jax.block_until_ready(
        jax.jit(functools.partial(downsample_forward, out_dtype=jnp.bfloat16))(
            x, child_idx, child_mask, w, b, gamma, beta))
    err2 = float(jnp.abs(out2.astype(jnp.float32) - ref).max())
    assert err2 < 3e-2, f"single-tile max err {err2}"

    print("KERNEL_OK")
</pallas_src>

<mosaic_0001>
module attributes {stable_mosaic.version = 11 : i64} {
  func.func @bn_apply_kernel(%arg0: i32, %arg1: memref<32x128xbf16, #tpu.memory_space<vmem>>, %arg2: memref<1x128xf32, #tpu.memory_space<vmem>>, %arg3: memref<1x128xf32, #tpu.memory_space<vmem>>, %arg4: memref<32x128xbf16, #tpu.memory_space<vmem>>) attributes {dimension_semantics = [#tpu.dimension_semantics<parallel>], iteration_bounds = array<i64: 4>, scalar_prefetch = 0 : i64, scratch_operands = 0 : i64, tpu.core_type = #tpu.core_type<tc>, window_params = [{transform_indices = @transform_0, window_bounds = array<i64: 32, 128>}, {pipeline_mode = #tpu.pipeline_mode<synchronous>, transform_indices = @transform_1, window_bounds = array<i64: 1, 128>}, {pipeline_mode = #tpu.pipeline_mode<synchronous>, transform_indices = @transform_2, window_bounds = array<i64: 1, 128>}, {transform_indices = @transform_3, window_bounds = array<i64: 32, 128>}]} {
    %c0 = arith.constant 0 : index
    %c0_0 = arith.constant 0 : index
    %0 = vector.load %arg1[%c0, %c0_0] : memref<32x128xbf16, #tpu.memory_space<vmem>>, vector<32x128xbf16>
    %1 = arith.extf %0 : vector<32x128xbf16> to vector<32x128xf32>
    %c0_1 = arith.constant 0 : index
    %c0_2 = arith.constant 0 : index
    %2 = vector.load %arg2[%c0_1, %c0_2] : memref<1x128xf32, #tpu.memory_space<vmem>>, vector<1x128xf32>
    %3 = vector.broadcast %2 : vector<1x128xf32> to vector<32x128xf32>
    %4 = arith.mulf %1, %3 : vector<32x128xf32>
    %c0_3 = arith.constant 0 : index
    %c0_4 = arith.constant 0 : index
    %5 = vector.load %arg3[%c0_3, %c0_4] : memref<1x128xf32, #tpu.memory_space<vmem>>, vector<1x128xf32>
    %6 = vector.broadcast %5 : vector<1x128xf32> to vector<32x128xf32>
    %7 = arith.addf %4, %6 : vector<32x128xf32>
    %8 = arith.truncf %7 : vector<32x128xf32> to vector<32x128xbf16>
    %c0_5 = arith.constant 0 : index
    %c0_6 = arith.constant 0 : index
    %9 = vector.load %arg4[%c0_5, %c0_6] : memref<32x128xbf16, #tpu.memory_space<vmem>>, vector<32x128xbf16>
    tpu.vector_store %arg4[%c0_5, %c0_6], %8 {strides = array<i32>} : memref<32x128xbf16, #tpu.memory_space<vmem>>, vector<32x128xbf16>,
    return
  }
  func.func @transform_0(%arg0: i32) -> (i32, i32) {
    %c0_i32 = arith.constant 0 : i32
    %c0_i32_0 = arith.constant 0 : i32
    return %arg0, %c0_i32 : i32, i32
  }
  func.func @transform_1(%arg0: i32) -> (i32, i32) {
    %c0_i32 = arith.constant 0 : i32
    %c0_i32_0 = arith.constant 0 : i32
    %c0_i32_1 = arith.constant 0 : i32
    return %c0_i32, %c0_i32_0 : i32, i32
  }
  func.func @transform_2(%arg0: i32) -> (i32, i32) {
    %c0_i32 = arith.constant 0 : i32
    %c0_i32_0 = arith.constant 0 : i32
    %c0_i32_1 = arith.constant 0 : i32
    return %c0_i32, %c0_i32_0 : i32, i32
  }
  func.func @transform_3(%arg0: i32) -> (i32, i32) {
    %c0_i32 = arith.constant 0 : i32
    %c0_i32_0 = arith.constant 0 : i32
    return %arg0, %c0_i32 : i32, i32
  }
}

module attributes {stable_mosaic.version = 11 : i64} {
  func.func @conv_stats_kernel(%arg0: i32, %arg1: memref<32x128xbf16, #tpu.memory_space<vmem>>, %arg2: memref<128x128xbf16, #tpu.memory_space<vmem>>, %arg3: memref<1x128xf32, #tpu.memory_space<vmem>>, %arg4: memref<1x128xf32, #tpu.memory_space<vmem>>, %arg5: memref<32x128xbf16, #tpu.memory_space<vmem>>, %arg6: memref<1x128xf32, #tpu.memory_space<vmem>>, %arg7: memref<1x128xf32, #tpu.memory_space<vmem>>, %arg8: memref<1x128xf32, #tpu.memory_space<vmem>>, %arg9: memref<1x128xf32, #tpu.memory_space<vmem>>) attributes {dimension_semantics = [#tpu.dimension_semantics<arbitrary>], iteration_bounds = array<i64: 4>, scalar_prefetch = 0 : i64, scratch_operands = 2 : i64, tpu.core_type = #tpu.core_type<tc>, window_params = [{transform_indices = @transform_0, window_bounds = array<i64: 32, 128>}, {pipeline_mode = #tpu.pipeline_mode<synchronous>, transform_indices = @transform_1, window_bounds = array<i64: 128, 128>}, {pipeline_mode = #tpu.pipeline_mode<synchronous>, transform_indices = @transform_2, window_bounds = array<i64: 1, 128>}, {pipeline_mode = #tpu.pipeline_mode<synchronous>, transform_indices = @transform_3, window_bounds = array<i64: 1, 128>}, {transform_indices = @transform_4, window_bounds = array<i64: 32, 128>}, {pipeline_mode = #tpu.pipeline_mode<synchronous>, transform_indices = @transform_5, window_bounds = array<i64: 1, 128>}, {pipeline_mode = #tpu.pipeline_mode<synchronous>, transform_indices = @transform_6, window_bounds = array<i64: 1, 128>}]} {
    %c0 = arith.constant 0 : index
    %c0_0 = arith.constant 0 : index
    %0 = vector.load %arg1[%c0, %c0_0] : memref<32x128xbf16, #tpu.memory_space<vmem>>, vector<32x128xbf16>
    %c0_1 = arith.constant 0 : index
    %c0_2 = arith.constant 0 : index
    %1 = vector.load %arg2[%c0_1, %c0_2] : memref<128x128xbf16, #tpu.memory_space<vmem>>, vector<128x128xbf16>
    %cst = arith.constant dense<0.000000e+00> : vector<32x128xf32>
    %2 = tpu.matmul %0, %1, %cst {dimension_numbers = #tpu.dot_dimension_numbers<[1], [0], [0], [1], [0, 0, 1, 1], [], []>} : vector<32x128xbf16>, vector<128x128xbf16>, vector<32x128xf32> -> vector<32x128xf32>
    %3 = arith.truncf %2 : vector<32x128xf32> to vector<32x128xbf16>
    %c0_3 = arith.constant 0 : index
    %c0_4 = arith.constant 0 : index
    %4 = vector.load %arg5[%c0_3, %c0_4] : memref<32x128xbf16, #tpu.memory_space<vmem>>, vector<32x128xbf16>
    tpu.vector_store %arg5[%c0_3, %c0_4], %3 {strides = array<i32>} : memref<32x128xbf16, #tpu.memory_space<vmem>>, vector<32x128xbf16>,
    %c32_i32 = arith.constant 32 : i32
    %5 = arith.muli %arg0, %c32_i32 : i32
    %6 = tpu.iota {dimensions = array<i32: 0>} : vector<32x1xi32>
    %7 = vector.broadcast %5 : i32 to vector<32x1xi32>
    %8 = arith.addi %7, %6 : vector<32x1xi32>
    %c100_i32 = arith.constant 100 : i32
    %9 = vector.broadcast %c100_i32 : i32 to vector<32x1xi32>
    %10 = arith.cmpi slt, %8, %9 : vector<32x1xi32>
    %c32_i32_5 = arith.constant 32 : i32
    %11 = arith.muli %arg0, %c32_i32_5 : i32
    %c100_i32_6 = arith.constant 100 : i32
    %12 = arith.subi %c100_i32_6, %11 : i32
    %c32_i32_7 = arith.constant 32 : i32
    %13 = arith.minsi %c32_i32_7, %12 : i32
    %14 = arith.sitofp %13 : i32 to f32
    %cst_8 = arith.constant 0.000000e+00 : f32
    %15 = vector.shape_cast %10 : vector<32x1xi1> to vector<32x1xi1>
    %16 = vector.broadcast %15 : vector<32x1xi1> to vector<32x128xi1>
    %17 = vector.broadcast %cst_8 : f32 to vector<32x128xf32>
    %18 = arith.select %16, %2, %17 : vector<32x128xi1>, vector<32x128xf32>
    %cst_9 = arith.constant dense<0.000000e+00> : vector<128xf32>
    %19 = vector.multi_reduction <add>, %18, %cst_9 [0] : vector<32x128xf32> to vector<128xf32>
    %20 = vector.shape_cast %19 : vector<128xf32> to vector<1x128xf32>
    %21 = vector.broadcast %14 : f32 to vector<1x128xf32>
    %22 = arith.divf %20, %21 : vector<1x128xf32>
    %23 = vector.broadcast %22 : vector<1x128xf32> to vector<32x128xf32>
    %24 = arith.subf %2, %23 : vector<32x128xf32>
    %cst_10 = arith.constant 0.000000e+00 : f32
    %25 = vector.shape_cast %10 : vector<32x1xi1> to vector<32x1xi1>
    %26 = vector.broadcast %25 : vector<32x1xi1> to vector<32x128xi1>
    %27 = vector.broadcast %cst_10 : f32 to vector<32x128xf32>
    %28 = arith.select %26, %24, %27 : vector<32x128xi1>, vector<32x128xf32>
    %29 = arith.mulf %28, %28 : vector<32x128xf32>
    %cst_11 = arith.constant dense<0.000000e+00> : vector<128xf32>
    %30 = vector.multi_reduction <add>, %29, %cst_11 [0] : vector<32x128xf32> to vector<128xf32>
    %31 = vector.shape_cast %30 : vector<128xf32> to vector<1x128xf32>
    %c0_i32 = arith.constant 0 : i32
    %32 = arith.cmpi eq, %arg0, %c0_i32 : i32
    %33 = arith.extui %32 : i1 to i32
    %c0_i32_12 = arith.constant 0 : i32
    %34 = arith.cmpi ne, %33, %c0_i32_12 : i32
    scf.if %34 {
      %c0_16 = arith.constant 0 : index
      %c0_17 = arith.constant 0 : index
      %41 = vector.load %arg8[%c0_16, %c0_17] : memref<1x128xf32, #tpu.memory_space<vmem>>, vector<1x128xf32>
      tpu.vector_store %arg8[%c0_16, %c0_17], %22 {strides = array<i32>} : memref<1x128xf32, #tpu.memory_space<vmem>>, vector<1x128xf32>,
      %c0_18 = arith.constant 0 : index
      %c0_19 = arith.constant 0 : index
      %42 = vector.load %arg9[%c0_18, %c0_19] : memref<1x128xf32, #tpu.memory_space<vmem>>, vector<1x128xf32>
      tpu.vector_store %arg9[%c0_18, %c0_19], %31 {strides = array<i32>} : memref<1x128xf32, #tpu.memory_space<vmem>>, vector<1x128xf32>,
    } else {
    }
    %c0_i32_13 = arith.constant 0 : i32
    %35 = arith.cmpi sgt, %arg0, %c0_i32_13 : i32
    %36 = arith.extui %35 : i1 to i32
    %c0_i32_14 = arith.constant 0 : i32
    %37 = arith.cmpi ne, %36, %c0_i32_14 : i32
    scf.if %37 {
      %c32_i32_16 = arith.constant 32 : i32
      %41 = arith.muli %arg0, %c32_i32_16 : i32
      %42 = arith.sitofp %41 : i32 to f32
      %43 = arith.addf %42, %14 : f32
      %c0_17 = arith.constant 0 : index
      %c0_18 = arith.constant 0 : index
      %44 = vector.load %arg8[%c0_17, %c0_18] : memref<1x128xf32, #tpu.memory_space<vmem>>, vector<1x128xf32>
      %45 = arith.subf %22, %44 : vector<1x128xf32>
      %c0_19 = arith.constant 0 : index
      %c0_20 = arith.constant 0 : index
      %46 = vector.load %arg8[%c0_19, %c0_20] : memref<1x128xf32, #tpu.memory_space<vmem>>, vector<1x128xf32>
      %47 = arith.divf %14, %43 : f32
      %48 = vector.broadcast %47 : f32 to vector<1x128xf32>
      %49 = arith.mulf %45, %48 : vector<1x128xf32>
      %50 = arith.addf %46, %49 : vector<1x128xf32>
      %c0_21 = arith.constant 0 : index
      %c0_22 = arith.constant 0 : index
      %51 = vector.load %arg8[%c0_21, %c0_22] : memref<1x128xf32, #tpu.memory_space<vmem>>, vector<1x128xf32>
      tpu.vector_store %arg8[%c0_21, %c0_22], %50 {strides = array<i32>} : memref<1x128xf32, #tpu.memory_space<vmem>>, vector<1x128xf32>,
      %c0_23 = arith.constant 0 : index
      %c0_24 = arith.constant 0 : index
      %52 = vector.load %arg9[%c0_23, %c0_24] : memref<1x128xf32, #tpu.memory_space<vmem>>, vector<1x128xf32>
      %53 = arith.addf %52, %31 : vector<1x128xf32>
      %54 = arith.mulf %45, %45 : vector<1x128xf32>
      %55 = arith.mulf %42, %14 : f32
      %56 = arith.divf %55, %43 : f32
      %57 = vector.broadcast %56 : f32 to vector<1x128xf32>
      %58 = arith.mulf %54, %57 : vector<1x128xf32>
      %59 = arith.addf %53, %58 : vector<1x128xf32>
      %c0_25 = arith.constant 0 : index
      %c0_26 = arith.constant 0 : index
      %60 = vector.load %arg9[%c0_25, %c0_26] : memref<1x128xf32, #tpu.memory_space<vmem>>, vector<1x128xf32>
      tpu.vector_store %arg9[%c0_25, %c0_26], %59 {strides = array<i32>} : memref<1x128xf32, #tpu.memory_space<vmem>>, vector<1x128xf32>,
    } else {
    }
    %c3_i32 = arith.constant 3 : i32
    %38 = arith.cmpi eq, %arg0, %c3_i32 : i32
    %39 = arith.extui %38 : i1 to i32
    %c0_i32_15 = arith.constant 0 : i32
    %40 = arith.cmpi ne, %39, %c0_i32_15 : i32
    scf.if %40 {
      %c0_16 = arith.constant 0 : index
      %c0_17 = arith.constant 0 : index
      %41 = vector.load %arg9[%c0_16, %c0_17] : memref<1x128xf32, #tpu.memory_space<vmem>>, vector<1x128xf32>
      %cst_18 = arith.constant 1.000000e+02 : f32
      %42 = vector.broadcast %cst_18 : f32 to vector<1x128xf32>
      %43 = arith.divf %41, %42 : vector<1x128xf32>
      %c0_19 = arith.constant 0 : index
      %c0_20 = arith.constant 0 : index
      %44 = vector.load %arg3[%c0_19, %c0_20] : memref<1x128xf32, #tpu.memory_space<vmem>>, vector<1x128xf32>
      %cst_21 = arith.constant 9.99999974E-6 : f32
      %45 = vector.broadcast %cst_21 : f32 to vector<1x128xf32>
      %46 = arith.addf %43, %45 : vector<1x128xf32>
      %47 = math.rsqrt %46 : vector<1x128xf32>
      %48 = arith.mulf %44, %47 : vector<1x128xf32>
      %c0_22 = arith.constant 0 : index
      %c0_23 = arith.constant 0 : index
      %49 = vector.load %arg6[%c0_22, %c0_23] : memref<1x128xf32, #tpu.memory_space<vmem>>, vector<1x128xf32>
      tpu.vector_store %arg6[%c0_22, %c0_23], %48 {strides = array<i32>} : memref<1x128xf32, #tpu.memory_space<vmem>>, vector<1x128xf32>,
      %c0_24 = arith.constant 0 : index
      %c0_25 = arith.constant 0 : index
      %50 = vector.load %arg4[%c0_24, %c0_25] : memref<1x128xf32, #tpu.memory_space<vmem>>, vector<1x128xf32>
      %c0_26 = arith.constant 0 : index
      %c0_27 = arith.constant 0 : index
      %51 = vector.load %arg8[%c0_26, %c0_27] : memref<1x128xf32, #tpu.memory_space<vmem>>, vector<1x128xf32>
      %52 = arith.mulf %51, %48 : vector<1x128xf32>
      %53 = arith.subf %50, %52 : vector<1x128xf32>
      %c0_28 = arith.constant 0 : index
      %c0_29 = arith.constant 0 : index
      %54 = vector.load %arg7[%c0_28, %c0_29] : memref<1x128xf32, #tpu.memory_space<vmem>>, vector<1x128xf32>
      tpu.vector_store %arg7[%c0_28, %c0_29], %53 {strides = array<i32>} : memref<1x128xf32, #tpu.memory_space<vmem>>, vector<1x128xf32>,
    } else {
    }
    return
  }
  func.func @transform_0(%arg0: i32) -> (i32, i32) {
    %c0_i32 = arith.constant 0 : i32
    %c0_i32_0 = arith.constant 0 : i32
    return %arg0, %c0_i32 : i32, i32
  }
  func.func @transform_1(%arg0: i32) -> (i32, i32) {
    %c0_i32 = arith.constant 0 : i32
    %c0_i32_0 = arith.constant 0 : i32
    %c0_i32_1 = arith.constant 0 : i32
    return %c0_i32, %c0_i32_0 : i32, i32
  }
  func.func @transform_2(%arg0: i32) -> (i32, i32) {
    %c0_i32 = arith.constant 0 : i32
    %c0_i32_0 = arith.constant 0 : i32
    %c0_i32_1 = arith.constant 0 : i32
    return %c0_i32, %c0_i32_0 : i32, i32
  }
  func.func @transform_3(%arg0: i32) -> (i32, i32) {
    %c0_i32 = arith.constant 0 : i32
    %c0_i32_0 = arith.constant 0 : i32
    %c0_i32_1 = arith.constant 0 : i32
    return %c0_i32, %c0_i32_0 : i32, i32
  }
  func.func @transform_4(%arg0: i32) -> (i32, i32) {
    %c0_i32 = arith.constant 0 : i32
    %c0_i32_0 = arith.constant 0 : i32
    return %arg0, %c0_i32 : i32, i32
  }
  func.func @transform_5(%arg0: i32) -> (i32, i32) {
    %c0_i32 = arith.constant 0 : i32
    %c0_i32_0 = arith.constant 0 : i32
    %c0_i32_1 = arith.constant 0 : i32
    return %c0_i32, %c0_i32_0 : i32, i32
  }
  func.func @transform_6(%arg0: i32) -> (i32, i32) {
    %c0_i32 = arith.constant 0 : i32
    %c0_i32_0 = arith.constant 0 : i32
    %c0_i32_1 = arith.constant 0 : i32
    return %c0_i32, %c0_i32_0 : i32, i32
  }
}

</mosaic_0001>

<bundles_post_ra>
// kernel: downsample_forward.3
= control target key start
LH: loop header
LB: loop body
LE: loop exit
PB: predicated region body
PF: predicated region fallthrough
CT: control target
= control target key end

     0   :  { %s357_s12 = smov 0   ;;  %s380_s0 = inlined_call_operand.vmem [shape: bf16[128,128], index: 0, kind: input, shape index: {}, may-alias: {0,3}]   ;;  %s381_s1 = inlined_call_operand.vmem [shape: f32[1,128], index: 1, kind: input, shape index: {}]   ;;  %s382_s2 = inlined_call_operand.vmem [shape: f32[1,128], index: 2, kind: input, shape index: {}]   ;;  %s383_s3 = inlined_call_operand.vmem [shape: bf16[128,128], index: 3, kind: output, shape index: {}, may-alias: {0,3}]  }
   0x1 LB: > { %s280_s13 = sadd.s32 4294967295, %s335_s12   ;;  %p284_p0 = scmp.ge.s32.totalorder %s335_s12, 1  ;;  %s335_s12 = sphi %s357_s12, %s13_s12  }
   0x2   : > { %p138_p1 = scmp.lt.s32.totalorder %s335_s12, 5 }
   0x4   : > { %p139_p2 = pnand %p284_p0, %p138_p1 }
   0x5   : > { %s285_s14 = sshll.u32 (!%p139_p2), %s280_s13, 2  ;;  %v289_v2 = vld [vmem:[%s381_s1] ss:$0 sm:$0xff] (!%p139_p2) }
   0x6   : > { %142 = sbr.rel (%p139_p2) target bundleno = 26 (0x1a), region = 32  ;;  %p163_p3 = scmp.lt.s32.totalorder (!%p139_p2), %s285_s14, 15  ;;  %v290_v7 = vld [vmem:[%s382_s2] ss:$0 sm:$0xff] (!%p139_p2) }
   0xd   : > { %s385_s14 = smov (!%p163_p3, %s285_s14), 15 }
   0xe   : > { %s286_s15 = sshll.u32 %s385_s14, 2 }
   0xf   : > { %s166_s18 = scalar_lea.vmem %s380_s0, %s286_s15  ;;  %s172_s25 = scalar_lea.vmem %s383_s3, %s286_s15 }
  0x10   : > { %v302_v0 = vld [vmem:[%s166_s18] sm:$0xff]   ;;  %v319_v1 = vld [vmem:[%s166_s18 + $0x8] sm:$0xff]  }
  0x11   : > { %v303_v3 = vunpack.c.l.bf16 %v302_v0  ;;  %v304_v4 = vunpack.c.h.bf16 %v302_v0  ;;  %v307_v5 = vunpack.c.l.bf16 %v319_v1  ;;  %v308_v6 = vunpack.c.h.bf16 %v319_v1 }
  0x13   : > { %v189_v8 = vmul.f32 %v303_v3, %v289_v2  ;;  %v190_v9 = vmul.f32 %v304_v4, %v289_v2  ;;  %v191_v10 = vmul.f32 %v307_v5, %v289_v2  ;;  %v192_v11 = vmul.f32 %v308_v6, %v289_v2 }
  0x15   : > { %v200_v12 = vadd.f32 %v290_v7, %v189_v8  ;;  %v201_v13 = vadd.f32 %v290_v7, %v190_v9  ;;  %v202_v14 = vadd.f32 %v290_v7, %v191_v10  ;;  %v203_v15 = vadd.f32 %v290_v7, %v192_v11 }
  0x17   : > { %v312_v16 = vpack.c.bf16 %v201_v13, %v200_v12  ;;  %v317_v17 = vpack.c.bf16 %v203_v15, %v202_v14 }
  0x19   : > { %313 = vst [vmem:[%s172_s25] sm:$0xff] %v312_v16   ;;  %320 = vst [vmem:[%s172_s25 + $0x8] sm:$0xff] %v317_v17  }
  0x1a PF: > { %s13_s12 = sadd.s32 1, %s335_s12  }
  0x1b   : > { %p10_p4 = scmp.ge.s32.totalorder %s13_s12, 6  }
  0x1d   :  { %12 = sbr.rel (!%p10_p4) target bundleno = 1 (0x1), region = 62 }

// kernel: downsample_forward.2
= control target key start
LH: loop header
LB: loop body
LE: loop exit
PB: predicated region body
PF: predicated region fallthrough
CT: control target
= control target key end

     0   :  { %s726_s21 = smov 0   ;;  %s812_s0 = inlined_call_operand.vmem [shape: bf16[128,128], index: 0, kind: input, shape index: {}]   ;;  %s813_s1 = inlined_call_operand.vmem [shape: bf16[128,128], index: 1, kind: input, shape index: {}]   ;;  %s814_s2 = inlined_call_operand.vmem [shape: f32[1,128], index: 2, kind: input, shape index: {}]   ;;  %s815_s3 = inlined_call_operand.vmem [shape: f32[1,128], index: 3, kind: input, shape index: {}]   ;;  %s816_s4 = inlined_call_operand.vmem [shape: bf16[128,128], index: 4, kind: output, shape index: {0}]   ;;  %s817_s5 = inlined_call_operand.vmem [shape: f32[1,128], index: 5, kind: output, shape index: {1}]   ;;  %s818_s6 = inlined_call_operand.vmem [shape: f32[1,128], index: 6, kind: output, shape index: {2}]  }
   0x1 LB: > { %s732_s22 = sadd.s32 4294967295, %s689_s21   ;;  %p587_p0 = scmp.ge.s32.totalorder %s689_s21, 1  ;;  %s689_s21 = sphi %s726_s21, %s17_s21  }
   0x2   : > { %p208_p1 = scmp.lt.s32.totalorder %s689_s21, 5 }
   0x4   : > { %p209_p2 = pnand %p587_p0, %p208_p1 }
   0x5   : > { %v667_v0 = vld [vmem:[%s813_s1] sm:$0xff] (!%p209_p2)   ;;  %s588_s25 = sshll.u32 (!%p209_p2), %s732_s22, 2  ;;  %v668_v1 = vld [vmem:[%s813_s1 + $0x8] sm:$0xff] (!%p209_p2)   ;;  %v669_v2 = vld [vmem:[%s813_s1 + $0x10] sm:$0xff] (!%p209_p2)   ;;  %v401_v10 = vlaneseq (!%p209_p2)  ;;  %s770_s20 = sshll.u32 (!%p209_p2), %s732_s22, 5 }
   0x6   : > { %212 = sbr.rel (%p209_p2) target bundleno = 403 (0x193), region = 36  ;;  %p239_p3 = scmp.lt.s32.totalorder (!%p209_p2), %s588_s25, 15  ;;  %637 = vmatprep.subr.bf16.mxu0 (!%p209_p2), %v667_v0  ;;  %v670_v3 = vld [vmem:[%s813_s1 + $0x18] sm:$0xff] (!%p209_p2)   ;;  %v671_v5 = vld [vmem:[%s813_s1 + $0x20] sm:$0xff] (!%p209_p2)   ;;  %v672_v6 = vld [vmem:[%s813_s1 + $0x28] sm:$0xff] (!%p209_p2)   ;;  %v406_v13 = vstv (!%p209_p2), %s770_s20 }
   0x7   : > { %638 = vmatpush3.bf16.msra.mxu0 (!%p209_p2), %v667_v0  ;;  %v673_v7 = vld [vmem:[%s813_s1 + $0x30] sm:$0xff] (!%p209_p2)   ;;  %v674_v8 = vld [vmem:[%s813_s1 + $0x38] sm:$0xff] (!%p209_p2)   ;;  %v402_v11 = vshrl.u32 (!%p209_p2), %v401_v10, 7  ;;  %s415_s23 = ssub.s32 (!%p209_p2), 100, %s770_s20  ;;  %p607_p5 = scmp.ne.s32.totalorder (!%p209_p2), %s732_s22, 0 }
   0x8   : > { %639 = vmatprep.subr.bf16.mxu0 (!%p209_p2), %v668_v1  ;;  %p416_p4 = scmp.lt.s32.totalorder (!%p209_p2), %s415_s23, 32 }
   0x9   : > { %v403_v12 = vadd.s32 (!%p209_p2), 8, %v402_v11  ;;  %v404_v14 = vadd.s32 (!%p209_p2), 16, %v402_v11  ;;  %v407_v15 = vadd.s32 (!%p209_p2), %v406_v13, %v402_v11  ;;  %v405_v16 = vadd.s32 (!%p209_p2), 24, %v402_v11 }
   0xb   : > { %640 = vmatpush3.bf16.msra.mxu0 (!%p209_p2), %v668_v1  ;;  %v408_v17 = vadd.s32 (!%p209_p2), %v406_v13, %v403_v12  ;;  %v409_v18 = vadd.s32 (!%p209_p2), %v406_v13, %v404_v14  ;;  %vm411_vm0 = vcmp.lt.s32.totalorder (!%p209_p2), %v407_v15, 100  ;;  %v410_v21 = vadd.s32 (!%p209_p2), %v406_v13, %v405_v16 }
   0xc   : > { %641 = vmatprep.subr.bf16.mxu0 (!%p209_p2), %v669_v2 }
   0xd   : > { %s820_s25 = smov (!%p239_p3, %s588_s25), 15  ;;  %s822_s23 = smov (!%p416_p4, %s415_s23), 32  ;;  %vm412_vm1 = vcmp.lt.s32.totalorder %v408_v17, 100  ;;  %vm413_vm2 = vcmp.lt.s32.totalorder %v409_v18, 100  ;;  %vm414_vm3 = vcmp.lt.s32.totalorder %v410_v21, 100 }
   0xe   : > { %s589_s30 = sshll.u32 %s820_s25, 2  ;;  %s779_s28 = scvt.s32.f32 %s822_s23 }
   0xf   : > { %s242_s9 = scalar_lea.vmem %s812_s0, %s589_s30  ;;  %642 = vmatpush3.bf16.msra.mxu0 %v669_v2  ;;  %s248_s27 = scalar_lea.vmem %s816_s4, %s589_s30 }
  0x10   : > { %v675_v4 = vld [vmem:[%s242_s9] sm:$0xff]   ;;  %643 = vmatprep.subr.bf16.mxu0 %v670_v3  ;;  %v676_v9 = vld [vmem:[%s242_s9 + $0x8] sm:$0xff]   ;;  %v440_v30 = vstv %s779_s28 }
  0x11   : > { %653 = vmatprep.mubr.bf16.mxu0 %v675_v4  ;;  %677 = vrcp.f32 %v440_v30 }
  0x13   : > { %644 = vmatpush3.bf16.msra.mxu0 %v670_v3 }
  0x14   : > { %645 = vmatprep.subr.bf16.mxu0 %v671_v5 }
  0x17   : > { %646 = vmatpush3.bf16.msra.mxu0 %v671_v5 }
  0x18   : > { %647 = vmatprep.subr.bf16.mxu0 %v672_v6 }
  0x1b   : > { %648 = vmatpush3.bf16.msra.mxu0 %v672_v6  ;;  %v678_v39 = vpop.eup %677 }
  0x1c   : > { %649 = vmatprep.subr.bf16.mxu0 %v673_v7 }
  0x1f   : > { %650 = vmatpush3.bf16.msra.mxu0 %v673_v7 }
  0x20   : > { %651 = vmatprep.subr.bf16.mxu0 %v674_v8 }
  0x23   : > { %652 = vmatpush3.bf16.msra.mxu0 %v674_v8 }
  0x26   : > { %654 = vmatmul.mubr.bf16.vlgmr.msra.gmra.mrb[0].mxu0 %v676_v9 }
  0xf9   : > { %v655_v19 = vpop.f32.mrb[0].mxu0 }
  0xfa   : > { %v365_v20 = vpop.f32.mrb[1].mxu0  ;;  %v429_v29 = vsel %vm413_vm2, %v655_v19, 0.0 }
  0xfb   : > { %v656_v22 = vpop.f32.mrb[2].mxu0  ;;  %v427_v25 = vsel %vm411_vm0, %v365_v20, 0.0 }
  0xfc   : > { %v624_v23 = vpack.c.bf16 %v656_v22, %v655_v19  ;;  %v368_v24 = vpop.f32.mrb[3].mxu0  ;;  %v430_v32 = vsel %vm414_vm3, %v656_v22, 0.0 }
  0xfd   : > { %v619_v26 = vpack.c.bf16 %v368_v24, %v365_v20  ;;  %v428_v27 = vsel %vm412_vm1, %v368_v24, 0.0 }
  0xfe   : > { %626 = vst [vmem:[%s248_s27 + $0x8] sm:$0xff] %v624_v23   ;;  %v431_v28 = vadd.f32 %v428_v27, %v427_v25 }
  0xff   : > { %620 = vst [vmem:[%s248_s27] sm:$0xff] %v619_v26  }
 0x100   : > { %v432_v31 = vadd.f32 %v431_v28, %v429_v29 }
 0x102   : > { %v433_v33 = vadd.f32 %v432_v31, %v430_v32 }
 0x104   : > { %v434_v34 = vrot.slane %v433_v33, 4 }
 0x106   : > { %v435_v35 = vadd.f32 %v434_v34, %v433_v33 }
 0x108   : > { %v436_v36 = vrot.slane %v435_v35, 2 }
 0x10a   : > { %v437_v37 = vadd.f32 %v436_v36, %v435_v35 }
 0x10c   : > { %v438_v38 = vrot.slane %v437_v37, 1 }
 0x10e   : > { %v439_v40 = vadd.f32 %v438_v38, %v437_v37 }
 0x110   : > { %v442_v41 = vmul.f32 %v678_v39, %v439_v40 }
 0x112   : > { %v443_v42 = vsub.f32 %v365_v20, %v442_v41  ;;  %v444_v43 = vsub.f32 %v368_v24, %v442_v41  ;;  %v445_v44 = vsub.f32 %v655_v19, %v442_v41  ;;  %v446_v45 = vsub.f32 %v656_v22, %v442_v41  ;;  %468 = vst [vmem:[#allocation2] sm:$0x1] (!%p607_p5), %v442_v41 }
 0x114   : > { %v447_v46 = vsel %vm411_vm0, %v443_v42, 0.0  ;;  %v448_v47 = vsel %vm412_vm1, %v444_v43, 0.0  ;;  %v449_v48 = vsel %vm413_vm2, %v445_v44, 0.0  ;;  %v450_v51 = vsel %vm414_vm3, %v446_v45, 0.0 }
 0x115   : > { %v451_v49 = vmul.f32 %v447_v46, %v447_v46  ;;  %v452_v50 = vmul.f32 %v448_v47, %v448_v47  ;;  %v453_v52 = vmul.f32 %v449_v48, %v449_v48  ;;  %v454_v54 = vmul.f32 %v450_v51, %v450_v51 }
 0x117   : > { %v455_v53 = vadd.f32 %v452_v50, %v451_v49 }
 0x119   : > { %v456_v55 = vadd.f32 %v455_v53, %v453_v52 }
 0x11b   : > { %v457_v56 = vadd.f32 %v456_v55, %v454_v54 }
 0x11d   : > { %v458_v57 = vrot.slane %v457_v56, 4 }
 0x11f   : > { %v459_v58 = vadd.f32 %v458_v57, %v457_v56 }
 0x121   : > { %v460_v59 = vrot.slane %v459_v58, 2  ;;  %467 = sbr.rel (%p607_p5) target bundleno = 298 (0x12a), region = 40 }
 0x123   : > { %v461_v60 = vadd.f32 %v460_v59, %v459_v58 }
 0x125   : > { %v462_v61 = vrot.slane %v461_v60, 1 }
 0x127   : > { %v463_v62 = vadd.f32 %v462_v61, %v461_v60 }
 0x129   : > { %469 = vst [vmem:[#allocation3] sm:$0x1] %v463_v62 }
 0x12a PF: > { %p608_p6 = scmp.le.s32.totalorder %s732_s22, 0 }
 0x12b   : > { %s474_s25 = scvt.s32.f32 (!%p608_p6), %s770_s20  ;;  %v476_v1 = vld [vmem:[#allocation2] sm:$0x1] (!%p608_p6) }
 0x12c   : > { %473 = sbr.rel (%p608_p6) target bundleno = 374 (0x176), region = 44  ;;  %v477_v2 = vsub.f32 (!%p608_p6), %v442_v41, %v476_v1 }
 0x12d   : > { %s475_s29 = sadd.f32 (!%p608_p6), %s474_s25, %s779_s28  ;;  %s489_s30 = smul.f32 (!%p608_p6), %s474_s25, %s779_s28 }
 0x12e   : > { %v488_v4 = vmul.f32 (!%p608_p6), %v477_v2, %v477_v2 }
 0x12f   : > { %v478_v63 = vstv (!%p608_p6), %s475_s29 }
 0x130   : > { %679 = vrcp.f32 (!%p608_p6), %v478_v63  ;;  %v486_v3 = vld [vmem:[#allocation3] sm:$0x1] (!%p608_p6) }
 0x131   : > { %v487_v6 = vadd.f32 (!%p608_p6), %v486_v3, %v463_v62 }
 0x13a   : > { %v680_v0 = vpop.eup %679 }
 0x13b   : > { %657 = vpush %v680_v0 }
 0x16c   : > { %s658_s7 = spop %657 }
 0x16d   : > { %s481_s8 = smul.f32 %s658_s7, %s779_s28 }
 0x16e   : > { %s493_s9 = smul.f32 %s658_s7, %s489_s30 }
 0x16f   : > { %v482_v5 = vstv %s481_s8 }
 0x170   : > { %v483_v7 = vmul.f32 %v482_v5, %v477_v2  ;;  %v494_v8 = vstv %s493_s9 }
 0x171   : > { %v495_v9 = vmul.f32 %v494_v8, %v488_v4 }
 0x172   : > { %v484_v10 = vadd.f32 %v483_v7, %v476_v1 }
 0x173   : > { %v496_v11 = vadd.f32 %v495_v9, %v487_v6 }
 0x174   : > { %485 = vst [vmem:[#allocation2] sm:$0x1] %v484_v10 }
 0x175   : > { %497 = vst [vmem:[#allocation3] sm:$0x1] %v496_v11 }
 0x176 PF: > { %p609_p7 = scmp.ne.s32.totalorder %s732_s22, 3 }
 0x177   : > { %v505_v15 = vld [vmem:[%s814_s2] sm:$0x1] (!%p609_p7) }
 0x178   : > { %501 = sbr.rel (%p609_p7) target bundleno = 403 (0x193), region = 48  ;;  %v510_v19 = vld [vmem:[%s815_s3] sm:$0x1] (!%p609_p7) }
 0x17b   : > { %v511_v17 = vld [vmem:[#allocation2] sm:$0x1] (!%p609_p7) }
 0x17c   : > { %v502_v12 = vld [vmem:[#allocation3] sm:$0x1] (!%p609_p7) }
 0x17d   : > { %v504_v13 = vmul.f32 (!%p609_p7), 0.01, %v502_v12 }
 0x17f   : > { %v506_v14 = vadd.f32 1e-05, %v504_v13 }
 0x181   : > { %681 = vrsqrt.f32 %v506_v14 }
 0x18b   : > { %v682_v16 = vpop.eup %681 }
 0x18c   : > { %v508_v18 = vmul.f32 %v682_v16, %v505_v15 }
 0x18e   : > { %509 = vst [vmem:[%s817_s5] sm:$0x1] %v508_v18  ;;  %v512_v20 = vmul.f32 %v511_v17, %v508_v18 }
 0x190   : > { %v513_v21 = vsub.f32 %v510_v19, %v512_v20 }
 0x192   : > { %514 = vst [vmem:[%s818_s6] sm:$0x1] %v513_v21 }
 0x193 PF: > { %s17_s21 = sadd.s32 1, %s689_s21  }
 0x194   : > { %p14_p8 = scmp.ge.s32.totalorder %s17_s21, 6  }
 0x196   :  { %16 = sbr.rel (!%p14_p8) target bundleno = 1 (0x1), region = 94 }

</bundles_post_ra>
